<compile_context>
chip_gen: v7x
topology: tpu7x:2x2x1
jax: 0.10.0
libtpu: 0.0.40
codegen_flags: <defaults>
</compile_context>

<pallas_src>
import functools

import jax
import jax.numpy as jnp
from jax.experimental import pallas as pl
from jax.experimental.pallas import tpu as pltpu

LANES = 128
TARGET_BLOCK_BYTES = 4 << 20        # ~4 MiB of input payload per grid step


def _detect_multi_tc() -> bool:
    """True on chips exposing two TensorCores per chip (v7x); False otherwise."""
    try:
        kind = jax.devices()[0].device_kind.lower().replace(" ", "")
    except Exception:
        return False
    return ("v7" in kind) or ("tpu7" in kind)


def _psnr_partial_kernel(a_ref, b_ref, out_ref, *,
                         blocks_per_split, block_rows, rows_data):
    """Accumulate per-lane partial sums of (a - b)^2 into the resident out block."""
    s = pl.program_id(0)              # split (TensorCore) index
    j = pl.program_id(1)              # block index within the split

    @pl.when(j == 0)
    def _init():
        out_ref[...] = jnp.zeros_like(out_ref)

    blk = s * blocks_per_split + j    # logical (unclamped) block index
    valid = rows_data - blk * block_rows   # rows of real data in this block

    # Fast path: fully valid interior block -> no mask work at all.
    @pl.when(valid >= block_rows)
    def _full_block():
        d = a_ref[...].astype(jnp.float32) - b_ref[...].astype(jnp.float32)
        out_ref[...] += jnp.sum(d * d, axis=0, keepdims=True)[None]

    # Slow path: ragged last block (Pallas pads partial blocks with unspecified
    # data) or a duplicated clamp block (valid <= 0 -> everything masked out).
    @pl.when(valid < block_rows)
    def _ragged_block():
        d = a_ref[...].astype(jnp.float32) - b_ref[...].astype(jnp.float32)
        row_ids = jax.lax.broadcasted_iota(jnp.int32, (block_rows, LANES), 0)
        d = jnp.where(row_ids < valid, d, 0.0)
        out_ref[...] += jnp.sum(d * d, axis=0, keepdims=True)[None]


def _sse_pallas(a2, b2, rows_data, block_rows, *, nsplit, core_parallel,
                deep_buffer, vmem_limit_bytes):
    """Sum-of-squared-errors partials over a (rows, 128) slab."""
    rows_array = a2.shape[0]
    n_blocks = pl.cdiv(rows_array, block_rows)
    nsplit = min(nsplit, n_blocks)
    blocks_per_split = pl.cdiv(n_blocks, nsplit)

    def in_map(s, j):
        # Clamp keeps the DMA in-bounds when nsplit*blocks_per_split > n_blocks;
        # the duplicated block is fully masked out in-kernel (valid <= 0).
        return (jnp.minimum(s * blocks_per_split + j, n_blocks - 1), 0)

    spec_kwargs = {"pipeline_mode": pl.Buffered(3)} if deep_buffer else {}
    in_spec = pl.BlockSpec((block_rows, LANES), in_map, **spec_kwargs)

    kernel = functools.partial(
        _psnr_partial_kernel,
        blocks_per_split=blocks_per_split,
        block_rows=block_rows,
        rows_data=rows_data,
    )

    split_sem = pltpu.CORE_PARALLEL if core_parallel else pltpu.ARBITRARY

    return pl.pallas_call(
        kernel,
        out_shape=jax.ShapeDtypeStruct((nsplit, 1, LANES), jnp.float32),
        grid_spec=pltpu.PrefetchScalarGridSpec(
            num_scalar_prefetch=0,
            grid=(nsplit, blocks_per_split),
            in_specs=[in_spec, in_spec],
            out_specs=pl.BlockSpec((1, 1, LANES), lambda s, j: (s, 0, 0)),
        ),
        compiler_params=pltpu.CompilerParams(
            dimension_semantics=(split_sem, pltpu.ARBITRARY),
            vmem_limit_bytes=vmem_limit_bytes),
    )(a2, b2)


def psnr(img1: jax.Array, img2: jax.Array) -> jax.Array:
    """PSNR over all elements of two same-shaped arrays (any layout/dtype)."""
    assert img1.shape == img2.shape, "PSNR requires equal shapes"
    n_valid = int(img1.size)
    if n_valid == 0:
        return jnp.float32(jnp.nan)   # torch's mean of an empty tensor is NaN

    a = jnp.reshape(img1, (-1,))
    b = jnp.reshape(img2, (-1,))

    rows = n_valid // LANES           # 128-aligned prefix rows
    n_prefix = rows * LANES
    tail = n_valid - n_prefix         # < 128 leftover elements

    sse = jnp.float32(0.0)
    if tail:
        # Tiny (<128-element) tail summed with plain jnp; avoids the old
        # full-array jnp.pad copy for non-multiple-of-128 sizes.
        dt = a[n_prefix:].astype(jnp.float32) - b[n_prefix:].astype(jnp.float32)
        sse = sse + jnp.sum(dt * dt)

    if rows:
        # TODO(synk): a fully copy-free ragged path would need a 1-D tail block;
        # the prefix slice below only triggers when size % 128 != 0.
        ap = a if not tail else a[:n_prefix]
        bp = b if not tail else b[:n_prefix]
        a2 = ap.reshape(rows, LANES)
        b2 = bp.reshape(rows, LANES)

        itemsize = max(jnp.dtype(a2.dtype).itemsize, jnp.dtype(b2.dtype).itemsize)
        block_rows = min(rows, max(256, TARGET_BLOCK_BYTES // (LANES * itemsize)))
        n_blocks = pl.cdiv(rows, block_rows)

        multi_tc = _detect_multi_tc()
        use_split = multi_tc and n_blocks >= 2
        try:
            partials = jax.block_until_ready(_sse_pallas(
                a2, b2, rows, block_rows,
                nsplit=2 if use_split else 1,
                core_parallel=use_split,
                deep_buffer=use_split and n_blocks >= 6,
                # 16 MiB of double-buffered inputs (24 MiB with Buffered(3)):
                # 32 MiB fits v7x's 64 MiB physical VMEM; 64 MiB gives headroom
                # on v5e/v6e (128 MiB physical, smaller scoped defaults).
                vmem_limit_bytes=(32 << 20) if multi_tc else (64 << 20)))
        except Exception:
            # Conservative fallback: 2 MiB-ish blocks, single core, no deep
            # buffering -- mirrors the previously validated configuration.
            partials = _sse_pallas(
                a2, b2, rows, min(rows, 4096),
                nsplit=1, core_parallel=False, deep_buffer=False,
                vmem_limit_bytes=32 << 20)
        sse = sse + jnp.sum(partials, dtype=jnp.float32)

    mse = sse / jnp.float32(n_valid)
    # 20 * log10(1 / sqrt(mse)) == -10 * log10(mse); mse == 0 -> +inf (as torch).
    return 20.0 * jnp.log10(1.0 / jnp.sqrt(mse))


def psnr_ref(img1, img2):
    mse = jnp.mean((img1.astype(jnp.float32) - img2.astype(jnp.float32)) ** 2)
    return 20.0 * jnp.log10(1.0 / jnp.sqrt(mse))


if __name__ == "__main__":
    key = jax.random.PRNGKey(0)
    k1, k2, k3, k4, k5, k6 = jax.random.split(key, 6)

    # Small NCHW image pair, consistent with the PyTorch module's inputs.
    img1 = jax.random.uniform(k1, (2, 4, 16, 16), dtype=jnp.float32)
    img2 = jnp.clip(img1 + 0.05 * jax.random.normal(k2, (2, 4, 16, 16)), 0.0, 1.0)
    out = jax.block_until_ready(psnr(img1, img2))
    ref = jax.block_until_ready(psnr_ref(img1, img2))
    assert jnp.allclose(out, ref, rtol=1e-4, atol=1e-3), (out, ref)

    # Multi-block path with a ragged (masked) last block.
    big1 = jax.random.uniform(k3, (1, 3, 640, 640), dtype=jnp.float32)
    big2 = jnp.clip(big1 + 0.1 * jax.random.normal(k4, (1, 3, 640, 640)), 0.0, 1.0)
    out2 = jax.block_until_ready(psnr(big1, big2))
    ref2 = jax.block_until_ready(psnr_ref(big1, big2))
    assert jnp.allclose(out2, ref2, rtol=1e-4, atol=1e-3), (out2, ref2)

    # Element count not a multiple of 128 (exercises the jnp tail combine).
    odd1 = jax.random.uniform(k5, (3, 37, 41), dtype=jnp.float32)
    odd2 = jnp.clip(odd1 + 0.1 * jax.random.normal(k6, (3, 37, 41)), 0.0, 1.0)
    out3 = jax.block_until_ready(psnr(odd1, odd2))
    ref3 = jax.block_until_ready(psnr_ref(odd1, odd2))
    assert jnp.allclose(out3, ref3, rtol=1e-4, atol=1e-3), (out3, ref3)

    print("KERNEL_OK")
</pallas_src>

<mosaic_0001>
module attributes {stable_mosaic.version = 11 : i64} {
  func.func @_psnr_partial_kernel(%arg0: i32, %arg1: i32, %arg2: memref<16x128xf32, #tpu.memory_space<vmem>>, %arg3: memref<16x128xf32, #tpu.memory_space<vmem>>, %arg4: memref<1x1x128xf32, #tpu.memory_space<vmem>>) attributes {dimension_semantics = [#tpu.dimension_semantics<arbitrary>, #tpu.dimension_semantics<arbitrary>], iteration_bounds = array<i64: 1, 1>, scalar_prefetch = 0 : i64, scratch_operands = 0 : i64, tpu.core_type = #tpu.core_type<tc>, window_params = [{transform_indices = @transform_0, window_bounds = array<i64: 16, 128>}, {transform_indices = @transform_1, window_bounds = array<i64: 16, 128>}, {transform_indices = @transform_2, window_bounds = array<i64: 1, 1, 128>}]} {
    %c0_i32 = arith.constant 0 : i32
    %0 = arith.cmpi eq, %arg1, %c0_i32 : i32
    %1 = arith.extui %0 : i1 to i32
    %c0_i32_0 = arith.constant 0 : i32
    %2 = arith.cmpi ne, %1, %c0_i32_0 : i32
    scf.if %2 {
      %cst = arith.constant 0.000000e+00 : f32
      %13 = vector.broadcast %cst : f32 to vector<1x1x128xf32>
      %c0 = arith.constant 0 : index
      %c0_6 = arith.constant 0 : index
      %c0_7 = arith.constant 0 : index
      %14 = vector.load %arg4[%c0, %c0_6, %c0_7] : memref<1x1x128xf32, #tpu.memory_space<vmem>>, vector<1x1x128xf32>
      tpu.vector_store %arg4[%c0, %c0_6, %c0_7], %13 {strides = array<i32>} : memref<1x1x128xf32, #tpu.memory_space<vmem>>, vector<1x1x128xf32>,
    } else {
    }
    %c1_i32 = arith.constant 1 : i32
    %3 = arith.muli %arg0, %c1_i32 : i32
    %4 = arith.addi %3, %arg1 : i32
    %c16_i32 = arith.constant 16 : i32
    %5 = arith.muli %4, %c16_i32 : i32
    %c16_i32_1 = arith.constant 16 : i32
    %6 = arith.subi %c16_i32_1, %5 : i32
    %c16_i32_2 = arith.constant 16 : i32
    %7 = arith.cmpi sge, %6, %c16_i32_2 : i32
    %8 = arith.extui %7 : i1 to i32
    %c0_i32_3 = arith.constant 0 : i32
    %9 = arith.cmpi ne, %8, %c0_i32_3 : i32
    scf.if %9 {
      %c0 = arith.constant 0 : index
      %c0_6 = arith.constant 0 : index
      %13 = vector.load %arg2[%c0, %c0_6] : memref<16x128xf32, #tpu.memory_space<vmem>>, vector<16x128xf32>
      %c0_7 = arith.constant 0 : index
      %c0_8 = arith.constant 0 : index
      %14 = vector.load %arg3[%c0_7, %c0_8] : memref<16x128xf32, #tpu.memory_space<vmem>>, vector<16x128xf32>
      %15 = arith.subf %13, %14 : vector<16x128xf32>
      %c0_9 = arith.constant 0 : index
      %c0_10 = arith.constant 0 : index
      %c0_11 = arith.constant 0 : index
      %16 = vector.load %arg4[%c0_9, %c0_10, %c0_11] : memref<1x1x128xf32, #tpu.memory_space<vmem>>, vector<1x1x128xf32>
      %17 = arith.mulf %15, %15 : vector<16x128xf32>
      %cst = arith.constant dense<0.000000e+00> : vector<128xf32>
      %18 = vector.multi_reduction <add>, %17, %cst [0] : vector<16x128xf32> to vector<128xf32>
      %19 = vector.shape_cast %18 : vector<128xf32> to vector<1x128xf32>
      %20 = vector.shape_cast %19 : vector<1x128xf32> to vector<1x1x128xf32>
      %21 = arith.addf %16, %20 : vector<1x1x128xf32>
      %c0_12 = arith.constant 0 : index
      %c0_13 = arith.constant 0 : index
      %c0_14 = arith.constant 0 : index
      %22 = vector.load %arg4[%c0_12, %c0_13, %c0_14] : memref<1x1x128xf32, #tpu.memory_space<vmem>>, vector<1x1x128xf32>
      tpu.vector_store %arg4[%c0_12, %c0_13, %c0_14], %21 {strides = array<i32>} : memref<1x1x128xf32, #tpu.memory_space<vmem>>, vector<1x1x128xf32>,
    } else {
    }
    %c16_i32_4 = arith.constant 16 : i32
    %10 = arith.cmpi slt, %6, %c16_i32_4 : i32
    %11 = arith.extui %10 : i1 to i32
    %c0_i32_5 = arith.constant 0 : i32
    %12 = arith.cmpi ne, %11, %c0_i32_5 : i32
    scf.if %12 {
      %c0 = arith.constant 0 : index
      %c0_6 = arith.constant 0 : index
      %13 = vector.load %arg2[%c0, %c0_6] : memref<16x128xf32, #tpu.memory_space<vmem>>, vector<16x128xf32>
      %c0_7 = arith.constant 0 : index
      %c0_8 = arith.constant 0 : index
      %14 = vector.load %arg3[%c0_7, %c0_8] : memref<16x128xf32, #tpu.memory_space<vmem>>, vector<16x128xf32>
      %15 = arith.subf %13, %14 : vector<16x128xf32>
      %16 = tpu.iota {dimensions = array<i32: 0>} : vector<16x128xi32>
      %17 = vector.broadcast %6 : i32 to vector<16x128xi32>
      %18 = arith.cmpi slt, %16, %17 : vector<16x128xi32>
      %cst = arith.constant 0.000000e+00 : f32
      %19 = vector.broadcast %cst : f32 to vector<16x128xf32>
      %20 = arith.select %18, %15, %19 : vector<16x128xi1>, vector<16x128xf32>
      %c0_9 = arith.constant 0 : index
      %c0_10 = arith.constant 0 : index
      %c0_11 = arith.constant 0 : index
      %21 = vector.load %arg4[%c0_9, %c0_10, %c0_11] : memref<1x1x128xf32, #tpu.memory_space<vmem>>, vector<1x1x128xf32>
      %22 = arith.mulf %20, %20 : vector<16x128xf32>
      %cst_12 = arith.constant dense<0.000000e+00> : vector<128xf32>
      %23 = vector.multi_reduction <add>, %22, %cst_12 [0] : vector<16x128xf32> to vector<128xf32>
      %24 = vector.shape_cast %23 : vector<128xf32> to vector<1x128xf32>
      %25 = vector.shape_cast %24 : vector<1x128xf32> to vector<1x1x128xf32>
      %26 = arith.addf %21, %25 : vector<1x1x128xf32>
      %c0_13 = arith.constant 0 : index
      %c0_14 = arith.constant 0 : index
      %c0_15 = arith.constant 0 : index
      %27 = vector.load %arg4[%c0_13, %c0_14, %c0_15] : memref<1x1x128xf32, #tpu.memory_space<vmem>>, vector<1x1x128xf32>
      tpu.vector_store %arg4[%c0_13, %c0_14, %c0_15], %26 {strides = array<i32>} : memref<1x1x128xf32, #tpu.memory_space<vmem>>, vector<1x1x128xf32>,
    } else {
    }
    return
  }
  func.func @transform_0(%arg0: i32, %arg1: i32) -> (i32, i32) {
    %c1_i32 = arith.constant 1 : i32
    %0 = arith.muli %arg0, %c1_i32 : i32
    %1 = arith.addi %0, %arg1 : i32
    %c0_i32 = arith.constant 0 : i32
    %2 = arith.minsi %1, %c0_i32 : i32
    %c0_i32_0 = arith.constant 0 : i32
    %c0_i32_1 = arith.constant 0 : i32
    return %2, %c0_i32_0 : i32, i32
  }
  func.func @transform_1(%arg0: i32, %arg1: i32) -> (i32, i32) {
    %c1_i32 = arith.constant 1 : i32
    %0 = arith.muli %arg0, %c1_i32 : i32
    %1 = arith.addi %0, %arg1 : i32
    %c0_i32 = arith.constant 0 : i32
    %2 = arith.minsi %1, %c0_i32 : i32
    %c0_i32_0 = arith.constant 0 : i32
    %c0_i32_1 = arith.constant 0 : i32
    return %2, %c0_i32_0 : i32, i32
  }
  func.func @transform_2(%arg0: i32, %arg1: i32) -> (i32, i32, i32) {
    %c0_i32 = arith.constant 0 : i32
    %c0_i32_0 = arith.constant 0 : i32
    %c0_i32_1 = arith.constant 0 : i32
    return %arg0, %c0_i32, %c0_i32_0 : i32, i32, i32
  }
}

module attributes {stable_mosaic.version = 11 : i64} {
  func.func @_psnr_partial_kernel(%arg0: i32, %arg1: i32, %arg2: memref<16x128xf32, #tpu.memory_space<vmem>>, %arg3: memref<16x128xf32, #tpu.memory_space<vmem>>, %arg4: memref<1x1x128xf32, #tpu.memory_space<vmem>>) attributes {dimension_semantics = [#tpu.dimension_semantics<arbitrary>, #tpu.dimension_semantics<arbitrary>], iteration_bounds = array<i64: 1, 1>, scalar_prefetch = 0 : i64, scratch_operands = 0 : i64, tpu.core_type = #tpu.core_type<tc>, window_params = [{transform_indices = @transform_0, window_bounds = array<i64: 16, 128>}, {transform_indices = @transform_1, window_bounds = array<i64: 16, 128>}, {transform_indices = @transform_2, window_bounds = array<i64: 1, 1, 128>}]} {
    %c0_i32 = arith.constant 0 : i32
    %0 = arith.cmpi eq, %arg1, %c0_i32 : i32
    %1 = arith.extui %0 : i1 to i32
    %c0_i32_0 = arith.constant 0 : i32
    %2 = arith.cmpi ne, %1, %c0_i32_0 : i32
    scf.if %2 {
      %cst = arith.constant 0.000000e+00 : f32
      %13 = vector.broadcast %cst : f32 to vector<1x1x128xf32>
      %c0 = arith.constant 0 : index
      %c0_6 = arith.constant 0 : index
      %c0_7 = arith.constant 0 : index
      %14 = vector.load %arg4[%c0, %c0_6, %c0_7] : memref<1x1x128xf32, #tpu.memory_space<vmem>>, vector<1x1x128xf32>
      tpu.vector_store %arg4[%c0, %c0_6, %c0_7], %13 {strides = array<i32>} : memref<1x1x128xf32, #tpu.memory_space<vmem>>, vector<1x1x128xf32>,
    } else {
    }
    %c1_i32 = arith.constant 1 : i32
    %3 = arith.muli %arg0, %c1_i32 : i32
    %4 = arith.addi %3, %arg1 : i32
    %c16_i32 = arith.constant 16 : i32
    %5 = arith.muli %4, %c16_i32 : i32
    %c16_i32_1 = arith.constant 16 : i32
    %6 = arith.subi %c16_i32_1, %5 : i32
    %c16_i32_2 = arith.constant 16 : i32
    %7 = arith.cmpi sge, %6, %c16_i32_2 : i32
    %8 = arith.extui %7 : i1 to i32
    %c0_i32_3 = arith.constant 0 : i32
    %9 = arith.cmpi ne, %8, %c0_i32_3 : i32
    scf.if %9 {
      %c0 = arith.constant 0 : index
      %c0_6 = arith.constant 0 : index
      %13 = vector.load %arg2[%c0, %c0_6] : memref<16x128xf32, #tpu.memory_space<vmem>>, vector<16x128xf32>
      %c0_7 = arith.constant 0 : index
      %c0_8 = arith.constant 0 : index
      %14 = vector.load %arg3[%c0_7, %c0_8] : memref<16x128xf32, #tpu.memory_space<vmem>>, vector<16x128xf32>
      %15 = arith.subf %13, %14 : vector<16x128xf32>
      %c0_9 = arith.constant 0 : index
      %c0_10 = arith.constant 0 : index
      %c0_11 = arith.constant 0 : index
      %16 = vector.load %arg4[%c0_9, %c0_10, %c0_11] : memref<1x1x128xf32, #tpu.memory_space<vmem>>, vector<1x1x128xf32>
      %17 = arith.mulf %15, %15 : vector<16x128xf32>
      %cst = arith.constant dense<0.000000e+00> : vector<128xf32>
      %18 = vector.multi_reduction <add>, %17, %cst [0] : vector<16x128xf32> to vector<128xf32>
      %19 = vector.shape_cast %18 : vector<128xf32> to vector<1x128xf32>
      %20 = vector.shape_cast %19 : vector<1x128xf32> to vector<1x1x128xf32>
      %21 = arith.addf %16, %20 : vector<1x1x128xf32>
      %c0_12 = arith.constant 0 : index
      %c0_13 = arith.constant 0 : index
      %c0_14 = arith.constant 0 : index
      %22 = vector.load %arg4[%c0_12, %c0_13, %c0_14] : memref<1x1x128xf32, #tpu.memory_space<vmem>>, vector<1x1x128xf32>
      tpu.vector_store %arg4[%c0_12, %c0_13, %c0_14], %21 {strides = array<i32>} : memref<1x1x128xf32, #tpu.memory_space<vmem>>, vector<1x1x128xf32>,
    } else {
    }
    %c16_i32_4 = arith.constant 16 : i32
    %10 = arith.cmpi slt, %6, %c16_i32_4 : i32
    %11 = arith.extui %10 : i1 to i32
    %c0_i32_5 = arith.constant 0 : i32
    %12 = arith.cmpi ne, %11, %c0_i32_5 : i32
    scf.if %12 {
      %c0 = arith.constant 0 : index
      %c0_6 = arith.constant 0 : index
      %13 = vector.load %arg2[%c0, %c0_6] : memref<16x128xf32, #tpu.memory_space<vmem>>, vector<16x128xf32>
      %c0_7 = arith.constant 0 : index
      %c0_8 = arith.constant 0 : index
      %14 = vector.load %arg3[%c0_7, %c0_8] : memref<16x128xf32, #tpu.memory_space<vmem>>, vector<16x128xf32>
      %15 = arith.subf %13, %14 : vector<16x128xf32>
      %16 = tpu.iota {dimensions = array<i32: 0>} : vector<16x128xi32>
      %17 = vector.broadcast %6 : i32 to vector<16x128xi32>
      %18 = arith.cmpi slt, %16, %17 : vector<16x128xi32>
      %cst = arith.constant 0.000000e+00 : f32
      %19 = vector.broadcast %cst : f32 to vector<16x128xf32>
      %20 = arith.select %18, %15, %19 : vector<16x128xi1>, vector<16x128xf32>
      %c0_9 = arith.constant 0 : index
      %c0_10 = arith.constant 0 : index
      %c0_11 = arith.constant 0 : index
      %21 = vector.load %arg4[%c0_9, %c0_10, %c0_11] : memref<1x1x128xf32, #tpu.memory_space<vmem>>, vector<1x1x128xf32>
      %22 = arith.mulf %20, %20 : vector<16x128xf32>
      %cst_12 = arith.constant dense<0.000000e+00> : vector<128xf32>
      %23 = vector.multi_reduction <add>, %22, %cst_12 [0] : vector<16x128xf32> to vector<128xf32>
      %24 = vector.shape_cast %23 : vector<128xf32> to vector<1x128xf32>
      %25 = vector.shape_cast %24 : vector<1x128xf32> to vector<1x1x128xf32>
      %26 = arith.addf %21, %25 : vector<1x1x128xf32>
      %c0_13 = arith.constant 0 : index
      %c0_14 = arith.constant 0 : index
      %c0_15 = arith.constant 0 : index
      %27 = vector.load %arg4[%c0_13, %c0_14, %c0_15] : memref<1x1x128xf32, #tpu.memory_space<vmem>>, vector<1x1x128xf32>
      tpu.vector_store %arg4[%c0_13, %c0_14, %c0_15], %26 {strides = array<i32>} : memref<1x1x128xf32, #tpu.memory_space<vmem>>, vector<1x1x128xf32>,
    } else {
    }
    return
  }
  func.func @transform_0(%arg0: i32, %arg1: i32) -> (i32, i32) {
    %c1_i32 = arith.constant 1 : i32
    %0 = arith.muli %arg0, %c1_i32 : i32
    %1 = arith.addi %0, %arg1 : i32
    %c0_i32 = arith.constant 0 : i32
    %2 = arith.minsi %1, %c0_i32 : i32
    %c0_i32_0 = arith.constant 0 : i32
    %c0_i32_1 = arith.constant 0 : i32
    return %2, %c0_i32_0 : i32, i32
  }
  func.func @transform_1(%arg0: i32, %arg1: i32) -> (i32, i32) {
    %c1_i32 = arith.constant 1 : i32
    %0 = arith.muli %arg0, %c1_i32 : i32
    %1 = arith.addi %0, %arg1 : i32
    %c0_i32 = arith.constant 0 : i32
    %2 = arith.minsi %1, %c0_i32 : i32
    %c0_i32_0 = arith.constant 0 : i32
    %c0_i32_1 = arith.constant 0 : i32
    return %2, %c0_i32_0 : i32, i32
  }
  func.func @transform_2(%arg0: i32, %arg1: i32) -> (i32, i32, i32) {
    %c0_i32 = arith.constant 0 : i32
    %c0_i32_0 = arith.constant 0 : i32
    %c0_i32_1 = arith.constant 0 : i32
    return %arg0, %c0_i32, %c0_i32_0 : i32, i32, i32
  }
}

</mosaic_0001>

<bundles_post_ra>
// kernel: tpu_custom_call.1
= control target key start
LH: loop header
LB: loop body
LE: loop exit
PB: predicated region body
PF: predicated region fallthrough
CT: control target
= control target key end

     0   :  { %7 = vsyncpa [#allocation3], 0  ;;  %s275_s0 = inlined_call_operand.hbm [shape: f32[16,128], index: 0, kind: input, shape index: {}]   ;;  %s276_s1 = inlined_call_operand.hbm [shape: f32[16,128], index: 1, kind: input, shape index: {}]   ;;  %s277_s2 = inlined_call_operand.hbm [shape: f32[1,1,128], index: 2, kind: output, shape index: {}]  }
   0x1   :  { %8 = vsyncpa [#allocation6], 0 }
   0x2   :  { %9 = vsyncpa [#allocation4], 0  ;;  %s218_s9 = smov [#allocation2]   ;;  %s146_s13 = scalar_lea.hbm %s275_s0, 256 }
   0x3   :  { %s21_s10 = sshll.u32 %s218_s9, 4  ;;  %p147_p0 = scmp.ne.s32.totalorder %s275_s0, %s146_s13  ;;  %s22_s10 = int_to_ptr.vmem [resolvable:$true] %s21_s10 }
   0x4   :  { %p150_p1 = scmp.lt.u32.totalorder %s146_s13, %s275_s0 }
   0x6   :  { %p152_p2 = pnand %p150_p1, %p147_p0 }
   0x8   :  { %155 = shalt.err (!%p152_p2)
}
   0x9   :  { %s156_s18 = scalar_lea.vmem %s22_s10, 256  ;;  %p161_p4 = scmp.lt.s32.totalorder %s22_s10, %s22_s10 }
   0xa   :  { %p157_p3 = scmp.ne.s32.totalorder %s22_s10, %s156_s18  ;;  %p162_p5 = scmp.lt.s32.totalorder %s156_s18, %s156_s18 }
   0xc   :  { %p163_p6 = por %p162_p5, %p161_p4 }
   0xe   :  { %p164_p7 = pnand %p163_p6, %p157_p3 }
  0x10   :  { %167 = shalt.err (!%p164_p7)
}
  0x11   :  { %s219_s19 = smov 128   ;;  %s220_s20 = smov 8  }
  0x12   :  { %27 = dma.hbm_to_vmem [thread:$0]  %s275_s0, 256, %s22_s10, [#allocation3], %s219_s19, %s219_s19, %s220_s20  }
  0x13   :  { %s221_s23 = smov [#allocation5]   ;;  %s168_s27 = scalar_lea.hbm %s276_s1, 256 }
  0x14   :  { %s39_s24 = sshll.u32 %s221_s23, 4  ;;  %p169_p8 = scmp.ne.s32.totalorder %s276_s1, %s168_s27  ;;  %s40_s24 = int_to_ptr.vmem [resolvable:$true] %s39_s24 }
  0x15   :  { %p172_p9 = scmp.lt.u32.totalorder %s168_s27, %s276_s1 }
  0x17   :  { %p174_p10 = pnand %p172_p9, %p169_p8 }
  0x19   :  { %177 = shalt.err (!%p174_p10)
}
  0x1a   :  { %s178_s4 = scalar_lea.vmem %s40_s24, 256  ;;  %p183_p12 = scmp.lt.s32.totalorder %s40_s24, %s40_s24 }
  0x1b   :  { %p179_p11 = scmp.ne.s32.totalorder %s40_s24, %s178_s4  ;;  %p184_p13 = scmp.lt.s32.totalorder %s178_s4, %s178_s4 }
  0x1d   :  { %p185_p0 = por %p184_p13, %p183_p12 }
  0x1f   :  { %p186_p1 = pnand %p185_p0, %p179_p11 }
  0x21   :  { %189 = shalt.err (!%p186_p1)
}
  0x22   :  { %45 = dma.hbm_to_vmem [thread:$0]  %s276_s1, 256, %s40_s24, [#allocation6], %s219_s19, %s219_s19, %s220_s20  }
  0x23   :  { %212 = dma.done.wait [#allocation3], 256  }
  0x24   :  { %213 = vsyncadd [#allocation3], 4294967040 }
  0x25   :  { %214 = dma.done.wait [#allocation6], 256  }
  0x26   :  { %215 = vsyncadd [#allocation6], 4294967040  ;;  %v222_v0 = vmov 0.0   ;;  %v72_v1 = vld [vmem:[#allocation2] sm:$0xff]  ;;  %v73_v2 = vld [vmem:[#allocation2 + $0x8] sm:$0xff]  ;;  %s223_s1 = smov [#allocation7]  }
  0x27   :  { %64 = vst [vmem:[#allocation7] sm:$0x1] %v222_v0  ;;  %v74_v3 = vld [vmem:[#allocation5] sm:$0xff]  ;;  %v75_v4 = vld [vmem:[#allocation5 + $0x8] sm:$0xff]  ;;  %s126_s6 = sshll.u32 %s223_s1, 4  ;;  %s127_s6 = int_to_ptr.vmem [resolvable:$true] %s126_s6 }
  0x28   :  { %v76_v5 = vsub.f32 %v72_v1, %v74_v3  ;;  %v77_v6 = vsub.f32 %v73_v2, %v75_v4  ;;  %s190_s7 = scalar_lea.vmem %s127_s6, 16  ;;  %s194_s8 = scalar_lea.vmem %s127_s6, 32 }
  0x29   :  { %p191_p2 = scmp.ne.s32.totalorder %s127_s6, %s190_s7  ;;  %p195_p3 = scmp.lt.s32.totalorder %s127_s6, %s127_s6 }
  0x2a   :  { %v79_v7 = vmul.f32 %v76_v5, %v76_v5  ;;  %v80_v8 = vmul.f32 %v77_v6, %v77_v6  ;;  %p196_p4 = scmp.lt.s32.totalorder %s194_s8, %s190_s7 }
  0x2c   :  { %v81_v9 = vadd.f32 %v80_v8, %v79_v7  ;;  %p197_p5 = por %p196_p4, %p195_p3 }
  0x2e   :  { %v82_v10 = vrot.slane %v81_v9, 4  ;;  %v78_v15 = vld [vmem:[#allocation7] sm:$0x1]  ;;  %p198_p6 = pnand %p197_p5, %p191_p2 }
  0x30   :  { %v83_v11 = vadd.f32 %v82_v10, %v81_v9 }
  0x32   :  { %v84_v12 = vrot.slane %v83_v11, 2 }
  0x34   :  { %v85_v13 = vadd.f32 %v84_v12, %v83_v11 }
  0x36   :  { %v86_v14 = vrot.slane %v85_v13, 1 }
  0x38   :  { %v87_v16 = vadd.f32 %v86_v14, %v85_v13 }
  0x3a   :  { %v88_v17 = vadd.f32 %v87_v16, %v78_v15 }
  0x3c   :  { %89 = vst [vmem:[#allocation7] sm:$0x1] %v88_v17 }
  0x3d   :  { %201 = shalt.err (!%p198_p6)
}
  0x3e   :  { %s202_s11 = scalar_lea.hbm %s277_s2, 16 }
  0x3f   :  { %p203_p7 = scmp.ne.s32.totalorder %s277_s2, %s202_s11  ;;  %p206_p8 = scmp.lt.u32.totalorder %s202_s11, %s277_s2 }
  0x41   :  { %p208_p9 = pnand %p206_p8, %p203_p7 }
  0x43   :  { %211 = shalt.err (!%p208_p9)
}
  0x44   :  { %129 = dma.vmem_to_hbm [thread:$0]  %s127_s6, 16, %s277_s2, [#allocation4]  }
  0x45   :  { %216 = dma.done.wait [#allocation4], 16  }
  0x46   :  { %217 = vsyncadd [#allocation4], 4294967280 }
  0x47   :  { %133 = vsyncpa [#allocation3], 1 }
  0x48   :  { %134 = vsyncpa [#allocation6], 1 }
  0x49   :  { %135 = vsyncpa [#allocation4], 1 }

// kernel: tpu_custom_call.1
= control target key start
LH: loop header
LB: loop body
LE: loop exit
PB: predicated region body
PF: predicated region fallthrough
CT: control target
= control target key end

     0   :  { %7 = vsyncpa [#allocation3], 0  ;;  %s275_s0 = inlined_call_operand.hbm [shape: f32[16,128], index: 0, kind: input, shape index: {}]   ;;  %s276_s1 = inlined_call_operand.hbm [shape: f32[16,128], index: 1, kind: input, shape index: {}]   ;;  %s277_s2 = inlined_call_operand.hbm [shape: f32[1,1,128], index: 2, kind: output, shape index: {}]  }
   0x1   :  { %8 = vsyncpa [#allocation6], 0 }
   0x2   :  { %9 = vsyncpa [#allocation4], 0  ;;  %s218_s9 = smov [#allocation2]   ;;  %s146_s13 = scalar_lea.hbm %s275_s0, 256 }
   0x3   :  { %s21_s10 = sshll.u32 %s218_s9, 4  ;;  %p147_p0 = scmp.ne.s32.totalorder %s275_s0, %s146_s13  ;;  %s22_s10 = int_to_ptr.vmem [resolvable:$true] %s21_s10 }
   0x4   :  { %p150_p1 = scmp.lt.u32.totalorder %s146_s13, %s275_s0 }
   0x6   :  { %p152_p2 = pnand %p150_p1, %p147_p0 }
   0x8   :  { %155 = shalt.err (!%p152_p2)
}
   0x9   :  { %s156_s18 = scalar_lea.vmem %s22_s10, 256  ;;  %p161_p4 = scmp.lt.s32.totalorder %s22_s10, %s22_s10 }
   0xa   :  { %p157_p3 = scmp.ne.s32.totalorder %s22_s10, %s156_s18  ;;  %p162_p5 = scmp.lt.s32.totalorder %s156_s18, %s156_s18 }
   0xc   :  { %p163_p6 = por %p162_p5, %p161_p4 }
   0xe   :  { %p164_p7 = pnand %p163_p6, %p157_p3 }
  0x10   :  { %167 = shalt.err (!%p164_p7)
}
  0x11   :  { %s219_s19 = smov 128   ;;  %s220_s20 = smov 8  }
  0x12   :  { %27 = dma.hbm_to_vmem [thread:$0]  %s275_s0, 256, %s22_s10, [#allocation3], %s219_s19, %s219_s19, %s220_s20  }
  0x13   :  { %s221_s23 = smov [#allocation5]   ;;  %s168_s27 = scalar_lea.hbm %s276_s1, 256 }
  0x14   :  { %s39_s24 = sshll.u32 %s221_s23, 4  ;;  %p169_p8 = scmp.ne.s32.totalorder %s276_s1, %s168_s27  ;;  %s40_s24 = int_to_ptr.vmem [resolvable:$true] %s39_s24 }
  0x15   :  { %p172_p9 = scmp.lt.u32.totalorder %s168_s27, %s276_s1 }
  0x17   :  { %p174_p10 = pnand %p172_p9, %p169_p8 }
  0x19   :  { %177 = shalt.err (!%p174_p10)
}
  0x1a   :  { %s178_s4 = scalar_lea.vmem %s40_s24, 256  ;;  %p183_p12 = scmp.lt.s32.totalorder %s40_s24, %s40_s24 }
  0x1b   :  { %p179_p11 = scmp.ne.s32.totalorder %s40_s24, %s178_s4  ;;  %p184_p13 = scmp.lt.s32.totalorder %s178_s4, %s178_s4 }
  0x1d   :  { %p185_p0 = por %p184_p13, %p183_p12 }
  0x1f   :  { %p186_p1 = pnand %p185_p0, %p179_p11 }
  0x21   :  { %189 = shalt.err (!%p186_p1)
}
  0x22   :  { %45 = dma.hbm_to_vmem [thread:$0]  %s276_s1, 256, %s40_s24, [#allocation6], %s219_s19, %s219_s19, %s220_s20  }
  0x23   :  { %212 = dma.done.wait [#allocation3], 256  }
  0x24   :  { %213 = vsyncadd [#allocation3], 4294967040 }
  0x25   :  { %214 = dma.done.wait [#allocation6], 256  }
  0x26   :  { %215 = vsyncadd [#allocation6], 4294967040  ;;  %v222_v0 = vmov 0.0   ;;  %v72_v1 = vld [vmem:[#allocation2] sm:$0xff]  ;;  %v73_v2 = vld [vmem:[#allocation2 + $0x8] sm:$0xff]  ;;  %s223_s1 = smov [#allocation7]  }
  0x27   :  { %64 = vst [vmem:[#allocation7] sm:$0x1] %v222_v0  ;;  %v74_v3 = vld [vmem:[#allocation5] sm:$0xff]  ;;  %v75_v4 = vld [vmem:[#allocation5 + $0x8] sm:$0xff]  ;;  %s126_s6 = sshll.u32 %s223_s1, 4  ;;  %s127_s6 = int_to_ptr.vmem [resolvable:$true] %s126_s6 }
  0x28   :  { %v76_v5 = vsub.f32 %v72_v1, %v74_v3  ;;  %v77_v6 = vsub.f32 %v73_v2, %v75_v4  ;;  %s190_s7 = scalar_lea.vmem %s127_s6, 16  ;;  %s194_s8 = scalar_lea.vmem %s127_s6, 32 }
  0x29   :  { %p191_p2 = scmp.ne.s32.totalorder %s127_s6, %s190_s7  ;;  %p195_p3 = scmp.lt.s32.totalorder %s127_s6, %s127_s6 }
  0x2a   :  { %v79_v7 = vmul.f32 %v76_v5, %v76_v5  ;;  %v80_v8 = vmul.f32 %v77_v6, %v77_v6  ;;  %p196_p4 = scmp.lt.s32.totalorder %s194_s8, %s190_s7 }
  0x2c   :  { %v81_v9 = vadd.f32 %v80_v8, %v79_v7  ;;  %p197_p5 = por %p196_p4, %p195_p3 }
  0x2e   :  { %v82_v10 = vrot.slane %v81_v9, 4  ;;  %v78_v15 = vld [vmem:[#allocation7] sm:$0x1]  ;;  %p198_p6 = pnand %p197_p5, %p191_p2 }
  0x30   :  { %v83_v11 = vadd.f32 %v82_v10, %v81_v9 }
  0x32   :  { %v84_v12 = vrot.slane %v83_v11, 2 }
  0x34   :  { %v85_v13 = vadd.f32 %v84_v12, %v83_v11 }
  0x36   :  { %v86_v14 = vrot.slane %v85_v13, 1 }
  0x38   :  { %v87_v16 = vadd.f32 %v86_v14, %v85_v13 }
  0x3a   :  { %v88_v17 = vadd.f32 %v87_v16, %v78_v15 }
  0x3c   :  { %89 = vst [vmem:[#allocation7] sm:$0x1] %v88_v17 }
  0x3d   :  { %201 = shalt.err (!%p198_p6)
}
  0x3e   :  { %s202_s11 = scalar_lea.hbm %s277_s2, 16 }
  0x3f   :  { %p203_p7 = scmp.ne.s32.totalorder %s277_s2, %s202_s11  ;;  %p206_p8 = scmp.lt.u32.totalorder %s202_s11, %s277_s2 }
  0x41   :  { %p208_p9 = pnand %p206_p8, %p203_p7 }
  0x43   :  { %211 = shalt.err (!%p208_p9)
}
  0x44   :  { %129 = dma.vmem_to_hbm [thread:$0]  %s127_s6, 16, %s277_s2, [#allocation4]  }
  0x45   :  { %216 = dma.done.wait [#allocation4], 16  }
  0x46   :  { %217 = vsyncadd [#allocation4], 4294967280 }
  0x47   :  { %133 = vsyncpa [#allocation3], 1 }
  0x48   :  { %134 = vsyncpa [#allocation6], 1 }
  0x49   :  { %135 = vsyncpa [#allocation4], 1 }

</bundles_post_ra>
